<compile_context>
chip_gen: v5e
topology: v5e:2x2
jax: 0.10.0
libtpu: 0.0.40
codegen_flags: <defaults>
</compile_context>

<pallas_src>
import numpy as np
import jax
import jax.numpy as jnp
from jax.experimental import pallas as pl
from jax.experimental.pallas import tpu as pltpu


# ----------------------------------------------------------------------------
# Pallas kernel: tiled complex matmul with bias folded into the k==0 init.
#   (Ar + jAi) @ (Br + jBi) + (bias_r + j*bias_i)
# Gauss/Karatsuba form with the operand sums hoisted OUT of the kernel:
#   t1 = Ar@Br, t2 = Ai@Bi, t3 = Asum@Bsum  (Asum/Bsum precomputed)
#   real = t1 - t2 ,  imag = t3 - t1 - t2
# bf16 operands, f32 accumulation directly into the resident output tiles.
# ----------------------------------------------------------------------------
def _cmm_kernel(ar_ref, ai_ref, as_ref, br_ref, bi_ref, bs_ref,
                biasr_ref, biasi_ref, or_ref, oi_ref):
    k = pl.program_id(2)

    @pl.when(k == 0)
    def _():
        # Fold bias into the accumulator init: no last-k epilogue pass.
        or_ref[...] = jnp.broadcast_to(biasr_ref[...], or_ref.shape)
        oi_ref[...] = jnp.broadcast_to(biasi_ref[...], oi_ref.shape)

    t1 = jnp.dot(ar_ref[...], br_ref[...], preferred_element_type=jnp.float32)
    t2 = jnp.dot(ai_ref[...], bi_ref[...], preferred_element_type=jnp.float32)
    t3 = jnp.dot(as_ref[...], bs_ref[...], preferred_element_type=jnp.float32)
    or_ref[...] += t1 - t2
    oi_ref[...] += t3 - t1 - t2


def _round_up(x, m):
    return ((x + m - 1) // m) * m


def _pick_tile(padded, gran, max_tile):
    """Largest tile <= max_tile (multiple of gran) that divides `padded`."""
    t = min(padded, max_tile)
    t = max((t // gran) * gran, gran)
    while padded % t != 0:
        t -= gran
    return t


def _pad_k(k):
    """Pad K so a large k-tile (<=512) divides it with few k-steps.

    Prefers the fewest pipeline k-steps (each ~0.35us overhead + an f32
    output RMW), tie-broken by the least zero-padding (wasted MXU MACs).
    Padded rows/cols are zeros packed once at init, so extra MACs are cheap.
    """
    if k <= 512:
        return _round_up(k, 128)
    best = None
    for tk in (512, 384, 256, 128):
        kp = _round_up(k, tk)
        key = (kp // tk, kp)          # (k-steps, padded size)
        if best is None or key < best[0]:
            best = (key, kp)
    return best[1]


def complex_matmul_bias(ar, ai, wr_p, wi_p, ws_p, bias_r, bias_i):
    """(ar + j*ai) @ W + bias.

    ar/ai        : (M, K) activation matrices (bf16 from conv path, f32 for fc)
    wr_p/wi_p/ws_p: (Kp, Np) bf16 weight matrices (ws = wr+wi), zero-padded
    bias_r/bias_i: (N,) f32 combined biases (br - bi, br + bi)
    Returns (M, N) f32 real/imag.
    """
    M, K = ar.shape
    Kp, Np = wr_p.shape
    N = bias_r.shape[0]

    # Small / skinny matmuls (deep layers & fc at small inputs) would be mostly
    # MXU padding + dispatch overhead through Pallas; let XLA fuse them.
    if M < 64 or N < 64:
        wr = wr_p[:K, :N].astype(jnp.float32)
        wi = wi_p[:K, :N].astype(jnp.float32)
        arf = ar.astype(jnp.float32)
        aif = ai.astype(jnp.float32)
        rr = jnp.dot(arf, wr, preferred_element_type=jnp.float32)
        ii = jnp.dot(aif, wi, preferred_element_type=jnp.float32)
        ri = jnp.dot(arf, wi, preferred_element_type=jnp.float32)
        ir = jnp.dot(aif, wr, preferred_element_type=jnp.float32)
        return rr - ii + bias_r[None, :], ri + ir + bias_i[None, :]

    Mp = _round_up(M, 16)              # 16: safe sublane granularity for bf16
    tm = _pick_tile(Mp, 16, 256)
    tn = _pick_tile(Np, 128, 512)
    tk = _pick_tile(Kp, 128, 512)

    # v7x has 2 TensorCores: make sure the two "parallel" grid axes expose
    # >= 2 tiles so megacore sharding has work for both cores.
    if (Mp // tm) * (Np // tn) < 2:
        if Np // 128 >= 2:
            tn = _pick_tile(Np, 128, max(128, Np // 2))
        else:
            tm = _pick_tile(Mp, 16, max(16, Mp // 2))

    def pad_act(a):
        # Activations arrive already bf16 from the conv path (bf16 im2col),
        # so this is just a zero-pad, not a second cast+copy.
        return jnp.pad(a.astype(jnp.bfloat16), ((0, Mp - M), (0, Kp - K)))

    arp = pad_act(ar)
    aip = pad_act(ai)
    asp = arp + aip                    # Gauss A-sum hoisted out of the kernel
    biasr_p = jnp.pad(bias_r, (0, Np - N)).reshape(1, Np)
    biasi_p = jnp.pad(bias_i, (0, Np - N)).reshape(1, Np)

    grid = (Mp // tm, Np // tn, Kp // tk)

    out_r, out_i = pl.pallas_call(
        _cmm_kernel,
        out_shape=(jax.ShapeDtypeStruct((Mp, Np), jnp.float32),
                   jax.ShapeDtypeStruct((Mp, Np), jnp.float32)),
        grid_spec=pltpu.PrefetchScalarGridSpec(
            num_scalar_prefetch=0,
            grid=grid,
            in_specs=[pl.BlockSpec((tm, tk), lambda i, j, k: (i, k)),
                      pl.BlockSpec((tm, tk), lambda i, j, k: (i, k)),
                      pl.BlockSpec((tm, tk), lambda i, j, k: (i, k)),
                      pl.BlockSpec((tk, tn), lambda i, j, k: (k, j)),
                      pl.BlockSpec((tk, tn), lambda i, j, k: (k, j)),
                      pl.BlockSpec((tk, tn), lambda i, j, k: (k, j)),
                      pl.BlockSpec((1, tn), lambda i, j, k: (0, j)),
                      pl.BlockSpec((1, tn), lambda i, j, k: (0, j))],
            out_specs=[pl.BlockSpec((tm, tn), lambda i, j, k: (i, j)),
                       pl.BlockSpec((tm, tn), lambda i, j, k: (i, j))]),
        compiler_params=pltpu.CompilerParams(
            dimension_semantics=("parallel", "parallel", "arbitrary"),
            # Worst-case budget (tm=256, tk=512, tn=512): 6 double-buffered
            # bf16 streams + 2 resident f32 output tiles + Gauss temporaries
            # ~= 8.5 MiB; 32 MiB is safe on v5e/v6e/v7x.
            vmem_limit_bytes=32 * 1024 * 1024),
    )(arp, aip, asp, wr_p, wi_p, ws_p, biasr_p, biasi_p)

    return out_r[:M, :N], out_i[:M, :N]


# ----------------------------------------------------------------------------
# NHWC glue: im2col, complex conv / linear / bn / relu / maxpool
# ----------------------------------------------------------------------------
def _im2col_nhwc(x, ksize, stride, pad):
    """x: (N,H,W,C) -> (N*Ho*Wo, ksize*ksize*C), feature order (kh, kw, C)."""
    n, h, w, c = x.shape
    xp = jnp.pad(x, ((0, 0), (pad, pad), (pad, pad), (0, 0)))
    hp, wp = h + 2 * pad, w + 2 * pad
    ho = (hp - ksize) // stride + 1
    wo = (wp - ksize) // stride + 1
    cols = []
    for i in range(ksize):
        for j in range(ksize):
            cols.append(xp[:, i:i + stride * ho:stride,
                              j:j + stride * wo:stride, :])
    col = jnp.stack(cols, axis=3)            # (N, Ho, Wo, kh*kw, C)
    col = col.reshape(n * ho * wo, ksize * ksize * c)
    return col, ho, wo


def complex_conv2d(p, xr, xi, ksize, stride, pad):
    """NHWC complex conv via bf16 im2col + Pallas complex matmul (bias fused)."""
    n = xr.shape[0]
    # Cast to bf16 BEFORE im2col: the kxk-duplicated col matrix is half the
    # bytes and the matmul wrapper does not need a second pad/cast copy.
    colr, ho, wo = _im2col_nhwc(xr.astype(jnp.bfloat16), ksize, stride, pad)
    coli, _, _ = _im2col_nhwc(xi.astype(jnp.bfloat16), ksize, stride, pad)
    outr, outi = complex_matmul_bias(colr, coli, p["wr"], p["wi"], p["ws"],
                                     p["bias_r"], p["bias_i"])
    cout = p["bias_r"].shape[0]
    outr = outr.reshape(n, ho, wo, cout)     # NHWC: no transpose needed
    outi = outi.reshape(n, ho, wo, cout)
    return outr, outi


def complex_linear(p, xr, xi):
    return complex_matmul_bias(xr, xi, p["wr"], p["wi"], p["ws"],
                               p["bias_r"], p["bias_i"])


def complex_relu(xr, xi):
    return jnp.maximum(xr, 0.0), jnp.maximum(xi, 0.0)


def complex_bn(p, xr, xi, eps=1e-5):
    # TODO(synk): covariance-whitening ComplexBatchNorm2d not implemented;
    #             naive per-component BN with batch statistics is used.
    def bn(x, g, b):
        mu = x.mean(axis=(0, 1, 2), keepdims=True)
        var = x.var(axis=(0, 1, 2), keepdims=True)
        xn = (x - mu) * jax.lax.rsqrt(var + eps)
        return xn * g[None, None, None, :] + b[None, None, None, :]
    return bn(xr, p["gr"], p["betar"]), bn(xi, p["gi"], p["betai"])


def complex_maxpool(xr, xi, ksize=3, stride=2, pad=1):
    n, h, w, c = xr.shape
    hp, wp = h + 2 * pad, w + 2 * pad
    ho = (hp - ksize) // stride + 1
    wo = (wp - ksize) // stride + 1
    xrp = jnp.pad(xr, ((0, 0), (pad, pad), (pad, pad), (0, 0)))
    xip = jnp.pad(xi, ((0, 0), (pad, pad), (pad, pad), (0, 0)))
    valid = jnp.pad(jnp.ones((n, h, w, c), dtype=bool),
                    ((0, 0), (pad, pad), (pad, pad), (0, 0)))
    wr_l, wi_l, wm_l = [], [], []
    for i in range(ksize):
        for j in range(ksize):
            pr = xrp[:, i:i + stride * ho:stride, j:j + stride * wo:stride, :]
            pi = xip[:, i:i + stride * ho:stride, j:j + stride * wo:stride, :]
            pv = valid[:, i:i + stride * ho:stride, j:j + stride * wo:stride, :]
            wr_l.append(pr)
            wi_l.append(pi)
            wm_l.append(jnp.where(pv, pr * pr + pi * pi, -1.0))
    wr_s = jnp.stack(wr_l, -1)
    wi_s = jnp.stack(wi_l, -1)
    wm_s = jnp.stack(wm_l, -1)
    idx = jnp.argmax(wm_s, axis=-1, keepdims=True)
    out_r = jnp.take_along_axis(wr_s, idx, axis=-1)[..., 0]
    out_i = jnp.take_along_axis(wi_s, idx, axis=-1)[..., 0]
    return out_r, out_i


# ----------------------------------------------------------------------------
# Parameter init (deterministic): weights pre-reshaped / padded / bf16-cast,
# Gauss weight-sum (wr+wi) packed once here.
# ----------------------------------------------------------------------------
def _pack_weights(wr_m, wi_m, br, bi):
    """wr_m/wi_m: (K, Cout) f32 -> padded bf16 matrices + combined f32 biases."""
    k, cout = wr_m.shape
    kp = _pad_k(k)
    npad = _round_up(cout, 128)

    def pad(w):
        return jnp.pad(w, ((0, kp - k), (0, npad - cout))).astype(jnp.bfloat16)

    return dict(wr=pad(wr_m), wi=pad(wi_m), ws=pad(wr_m + wi_m),
                bias_r=(br - bi).astype(jnp.float32),
                bias_i=(br + bi).astype(jnp.float32))


def _init_cconv(key, cin, cout, ksize):
    k1, k2, k3, k4 = jax.random.split(key, 4)
    fan = cin * ksize * ksize
    s = 1.0 / np.sqrt(fan)
    wr = jax.random.normal(k1, (cout, cin, ksize, ksize), jnp.float32) * s
    wi = jax.random.normal(k2, (cout, cin, ksize, ksize), jnp.float32) * s
    br = jax.random.normal(k3, (cout,), jnp.float32) * 0.01
    bi = jax.random.normal(k4, (cout,), jnp.float32) * 0.01
    # NHWC im2col feature order is (kh, kw, cin) -> arrange weight rows once.
    wr_m = wr.transpose(2, 3, 1, 0).reshape(fan, cout)
    wi_m = wi.transpose(2, 3, 1, 0).reshape(fan, cout)
    return _pack_weights(wr_m, wi_m, br, bi)


def _init_linear(key, cin, cout):
    k1, k2, k3, k4 = jax.random.split(key, 4)
    s = 1.0 / np.sqrt(cin)
    wr = jax.random.normal(k1, (cout, cin), jnp.float32) * s
    wi = jax.random.normal(k2, (cout, cin), jnp.float32) * s
    br = jax.random.normal(k3, (cout,), jnp.float32) * 0.01
    bi = jax.random.normal(k4, (cout,), jnp.float32) * 0.01
    return _pack_weights(wr.T, wi.T, br, bi)


def _init_bn(c):
    return dict(gr=jnp.ones((c,), jnp.float32),
                betar=jnp.zeros((c,), jnp.float32),
                gi=jnp.ones((c,), jnp.float32),
                betai=jnp.zeros((c,), jnp.float32))


def _init_resblock(kit, cin, cout, downsample):
    p = dict(
        conv1=_init_cconv(next(kit), cin, cout, 3),
        bn1=_init_bn(cout),
        conv2=_init_cconv(next(kit), cout, cout, 3),
        bn2=_init_bn(cout),
    )
    if downsample:
        p["sconv"] = _init_cconv(next(kit), cin, cout, 1)
        p["sbn"] = _init_bn(cout)
    return p


def init_resnet18(key, in_channels, num_class=2):
    kit = iter(jax.random.split(key, 64))
    return dict(
        conv0=_init_cconv(next(kit), in_channels, 64, 7),
        bn0=_init_bn(64),
        layer1=[_init_resblock(kit, 64, 64, False),
                _init_resblock(kit, 64, 64, False)],
        layer2=[_init_resblock(kit, 64, 128, True),
                _init_resblock(kit, 128, 128, False)],
        layer3=[_init_resblock(kit, 128, 256, True),
                _init_resblock(kit, 256, 256, False)],
        layer4=[_init_resblock(kit, 256, 512, True),
                _init_resblock(kit, 512, 512, False)],
        fc=_init_linear(next(kit), 512, num_class),
    )


# ----------------------------------------------------------------------------
# Forward pass (internal layout NHWC)
# ----------------------------------------------------------------------------
def resblock_fwd(p, xr, xi):
    downsample = "sconv" in p            # static (dict structure) -> jit-safe
    if downsample:
        sr, si = complex_conv2d(p["sconv"], xr, xi, ksize=1, stride=2, pad=0)
        sr, si = complex_bn(p["sbn"], sr, si)
        stride1 = 2
    else:
        sr, si = xr, xi
        stride1 = 1
    yr, yi = complex_conv2d(p["conv1"], xr, xi, ksize=3, stride=stride1, pad=1)
    yr, yi = complex_bn(p["bn1"], yr, yi)
    yr, yi = complex_relu(yr, yi)
    yr, yi = complex_conv2d(p["conv2"], yr, yi, ksize=3, stride=1, pad=1)
    yr, yi = complex_bn(p["bn2"], yr, yi)
    yr, yi = complex_relu(yr, yi)
    yr, yi = yr + sr, yi + si
    return complex_relu(yr, yi)


def resnet18_forward(params, xr_nchw, xi_nchw):
    # Convert NCHW -> NHWC once; channels stay lane-dense for all convs.
    xr = xr_nchw.transpose(0, 2, 3, 1)
    xi = xi_nchw.transpose(0, 2, 3, 1)
    # layer0: conv7x7/s2 -> maxpool3x3/s2 -> bn, then complex_relu (as in spec)
    xr, xi = complex_conv2d(params["conv0"], xr, xi, ksize=7, stride=2, pad=3)
    xr, xi = complex_maxpool(xr, xi, ksize=3, stride=2, pad=1)
    xr, xi = complex_bn(params["bn0"], xr, xi)
    xr, xi = complex_relu(xr, xi)
    for name in ("layer1", "layer2", "layer3", "layer4"):
        for blk in params[name]:
            xr, xi = resblock_fwd(blk, xr, xi)
    # global average pool + view(-1, 512)
    xr = xr.mean(axis=(1, 2))
    xi = xi.mean(axis=(1, 2))
    return complex_linear(params["fc"], xr, xi)


# ----------------------------------------------------------------------------
if __name__ == "__main__":
    key = jax.random.PRNGKey(0)
    kx_r, kx_i, kp = jax.random.split(key, 3)

    B, C, H, W = 2, 3, 16, 16            # small NCHW complex input
    x_real = jax.random.normal(kx_r, (B, C, H, W), jnp.float32)
    x_imag = jax.random.normal(kx_i, (B, C, H, W), jnp.float32)

    params = init_resnet18(kp, in_channels=C, num_class=2)

    fwd = jax.jit(resnet18_forward)
    out_r, out_i = fwd(params, x_real, x_imag)
    out_r = jax.block_until_ready(out_r)
    out_i = jax.block_until_ready(out_i)

    assert out_r.shape == (B, 2) and out_i.shape == (B, 2)
    assert bool(jnp.isfinite(out_r).all()) and bool(jnp.isfinite(out_i).all())
    print("KERNEL_OK")
</pallas_src>

<mosaic_0001>
module attributes {stable_mosaic.version = 11 : i64} {
  func.func @_cmm_kernel(%arg0: i32, %arg1: i32, %arg2: i32, %arg3: memref<64x256xbf16, #tpu.memory_space<vmem>>, %arg4: memref<64x256xbf16, #tpu.memory_space<vmem>>, %arg5: memref<64x256xbf16, #tpu.memory_space<vmem>>, %arg6: memref<256x128xbf16, #tpu.memory_space<vmem>>, %arg7: memref<256x128xbf16, #tpu.memory_space<vmem>>, %arg8: memref<256x128xbf16, #tpu.memory_space<vmem>>, %arg9: memref<1x128xf32, #tpu.memory_space<vmem>>, %arg10: memref<1x128xf32, #tpu.memory_space<vmem>>, %arg11: memref<64x128xf32, #tpu.memory_space<vmem>>, %arg12: memref<64x128xf32, #tpu.memory_space<vmem>>) attributes {dimension_semantics = [#tpu.dimension_semantics<parallel>, #tpu.dimension_semantics<parallel>, #tpu.dimension_semantics<arbitrary>], iteration_bounds = array<i64: 2, 1, 1>, scalar_prefetch = 0 : i64, scratch_operands = 0 : i64, tpu.core_type = #tpu.core_type<tc>, window_params = [{transform_indices = @transform_0, window_bounds = array<i64: 64, 256>}, {transform_indices = @transform_1, window_bounds = array<i64: 64, 256>}, {transform_indices = @transform_2, window_bounds = array<i64: 64, 256>}, {transform_indices = @transform_3, window_bounds = array<i64: 256, 128>}, {transform_indices = @transform_4, window_bounds = array<i64: 256, 128>}, {transform_indices = @transform_5, window_bounds = array<i64: 256, 128>}, {transform_indices = @transform_6, window_bounds = array<i64: 1, 128>}, {transform_indices = @transform_7, window_bounds = array<i64: 1, 128>}, {transform_indices = @transform_8, window_bounds = array<i64: 64, 128>}, {transform_indices = @transform_9, window_bounds = array<i64: 64, 128>}]} {
    %c0_i32 = arith.constant 0 : i32
    %0 = arith.cmpi eq, %arg2, %c0_i32 : i32
    %1 = arith.extui %0 : i1 to i32
    %c0_i32_0 = arith.constant 0 : i32
    %2 = arith.cmpi ne, %1, %c0_i32_0 : i32
    scf.if %2 {
      %c0_22 = arith.constant 0 : index
      %c0_23 = arith.constant 0 : index
      %21 = vector.load %arg9[%c0_22, %c0_23] : memref<1x128xf32, #tpu.memory_space<vmem>>, vector<1x128xf32>
      %22 = vector.shape_cast %21 : vector<1x128xf32> to vector<1x128xf32>
      %23 = vector.broadcast %22 : vector<1x128xf32> to vector<64x128xf32>
      %c0_24 = arith.constant 0 : index
      %c0_25 = arith.constant 0 : index
      %24 = vector.load %arg11[%c0_24, %c0_25] : memref<64x128xf32, #tpu.memory_space<vmem>>, vector<64x128xf32>
      tpu.vector_store %arg11[%c0_24, %c0_25], %23 {strides = array<i32>} : memref<64x128xf32, #tpu.memory_space<vmem>>, vector<64x128xf32>,
      %c0_26 = arith.constant 0 : index
      %c0_27 = arith.constant 0 : index
      %25 = vector.load %arg10[%c0_26, %c0_27] : memref<1x128xf32, #tpu.memory_space<vmem>>, vector<1x128xf32>
      %26 = vector.shape_cast %25 : vector<1x128xf32> to vector<1x128xf32>
      %27 = vector.broadcast %26 : vector<1x128xf32> to vector<64x128xf32>
      %c0_28 = arith.constant 0 : index
      %c0_29 = arith.constant 0 : index
      %28 = vector.load %arg12[%c0_28, %c0_29] : memref<64x128xf32, #tpu.memory_space<vmem>>, vector<64x128xf32>
      tpu.vector_store %arg12[%c0_28, %c0_29], %27 {strides = array<i32>} : memref<64x128xf32, #tpu.memory_space<vmem>>, vector<64x128xf32>,
    } else {
    }
    %c0 = arith.constant 0 : index
    %c0_1 = arith.constant 0 : index
    %3 = vector.load %arg3[%c0, %c0_1] : memref<64x256xbf16, #tpu.memory_space<vmem>>, vector<64x256xbf16>
    %c0_2 = arith.constant 0 : index
    %c0_3 = arith.constant 0 : index
    %4 = vector.load %arg6[%c0_2, %c0_3] : memref<256x128xbf16, #tpu.memory_space<vmem>>, vector<256x128xbf16>
    %cst = arith.constant dense<0.000000e+00> : vector<64x128xf32>
    %5 = tpu.matmul %3, %4, %cst {dimension_numbers = #tpu.dot_dimension_numbers<[1], [0], [0], [1], [0, 0, 1, 1], [], []>} : vector<64x256xbf16>, vector<256x128xbf16>, vector<64x128xf32> -> vector<64x128xf32>
    %c0_4 = arith.constant 0 : index
    %c0_5 = arith.constant 0 : index
    %6 = vector.load %arg4[%c0_4, %c0_5] : memref<64x256xbf16, #tpu.memory_space<vmem>>, vector<64x256xbf16>
    %c0_6 = arith.constant 0 : index
    %c0_7 = arith.constant 0 : index
    %7 = vector.load %arg7[%c0_6, %c0_7] : memref<256x128xbf16, #tpu.memory_space<vmem>>, vector<256x128xbf16>
    %cst_8 = arith.constant dense<0.000000e+00> : vector<64x128xf32>
    %8 = tpu.matmul %6, %7, %cst_8 {dimension_numbers = #tpu.dot_dimension_numbers<[1], [0], [0], [1], [0, 0, 1, 1], [], []>} : vector<64x256xbf16>, vector<256x128xbf16>, vector<64x128xf32> -> vector<64x128xf32>
    %c0_9 = arith.constant 0 : index
    %c0_10 = arith.constant 0 : index
    %9 = vector.load %arg5[%c0_9, %c0_10] : memref<64x256xbf16, #tpu.memory_space<vmem>>, vector<64x256xbf16>
    %c0_11 = arith.constant 0 : index
    %c0_12 = arith.constant 0 : index
    %10 = vector.load %arg8[%c0_11, %c0_12] : memref<256x128xbf16, #tpu.memory_space<vmem>>, vector<256x128xbf16>
    %cst_13 = arith.constant dense<0.000000e+00> : vector<64x128xf32>
    %11 = tpu.matmul %9, %10, %cst_13 {dimension_numbers = #tpu.dot_dimension_numbers<[1], [0], [0], [1], [0, 0, 1, 1], [], []>} : vector<64x256xbf16>, vector<256x128xbf16>, vector<64x128xf32> -> vector<64x128xf32>
    %c0_14 = arith.constant 0 : index
    %c0_15 = arith.constant 0 : index
    %12 = vector.load %arg11[%c0_14, %c0_15] : memref<64x128xf32, #tpu.memory_space<vmem>>, vector<64x128xf32>
    %13 = arith.subf %5, %8 : vector<64x128xf32>
    %14 = arith.addf %12, %13 : vector<64x128xf32>
    %c0_16 = arith.constant 0 : index
    %c0_17 = arith.constant 0 : index
    %15 = vector.load %arg11[%c0_16, %c0_17] : memref<64x128xf32, #tpu.memory_space<vmem>>, vector<64x128xf32>
    tpu.vector_store %arg11[%c0_16, %c0_17], %14 {strides = array<i32>} : memref<64x128xf32, #tpu.memory_space<vmem>>, vector<64x128xf32>,
    %c0_18 = arith.constant 0 : index
    %c0_19 = arith.constant 0 : index
    %16 = vector.load %arg12[%c0_18, %c0_19] : memref<64x128xf32, #tpu.memory_space<vmem>>, vector<64x128xf32>
    %17 = arith.subf %11, %5 : vector<64x128xf32>
    %18 = arith.subf %17, %8 : vector<64x128xf32>
    %19 = arith.addf %16, %18 : vector<64x128xf32>
    %c0_20 = arith.constant 0 : index
    %c0_21 = arith.constant 0 : index
    %20 = vector.load %arg12[%c0_20, %c0_21] : memref<64x128xf32, #tpu.memory_space<vmem>>, vector<64x128xf32>
    tpu.vector_store %arg12[%c0_20, %c0_21], %19 {strides = array<i32>} : memref<64x128xf32, #tpu.memory_space<vmem>>, vector<64x128xf32>,
    return
  }
  func.func @transform_0(%arg0: i32, %arg1: i32, %arg2: i32) -> (i32, i32) {
    %c0_i32 = arith.constant 0 : i32
    return %arg0, %arg2 : i32, i32
  }
  func.func @transform_1(%arg0: i32, %arg1: i32, %arg2: i32) -> (i32, i32) {
    %c0_i32 = arith.constant 0 : i32
    return %arg0, %arg2 : i32, i32
  }
  func.func @transform_2(%arg0: i32, %arg1: i32, %arg2: i32) -> (i32, i32) {
    %c0_i32 = arith.constant 0 : i32
    return %arg0, %arg2 : i32, i32
  }
  func.func @transform_3(%arg0: i32, %arg1: i32, %arg2: i32) -> (i32, i32) {
    %c0_i32 = arith.constant 0 : i32
    return %arg2, %arg1 : i32, i32
  }
  func.func @transform_4(%arg0: i32, %arg1: i32, %arg2: i32) -> (i32, i32) {
    %c0_i32 = arith.constant 0 : i32
    return %arg2, %arg1 : i32, i32
  }
  func.func @transform_5(%arg0: i32, %arg1: i32, %arg2: i32) -> (i32, i32) {
    %c0_i32 = arith.constant 0 : i32
    return %arg2, %arg1 : i32, i32
  }
  func.func @transform_6(%arg0: i32, %arg1: i32, %arg2: i32) -> (i32, i32) {
    %c0_i32 = arith.constant 0 : i32
    %c0_i32_0 = arith.constant 0 : i32
    return %c0_i32, %arg1 : i32, i32
  }
  func.func @transform_7(%arg0: i32, %arg1: i32, %arg2: i32) -> (i32, i32) {
    %c0_i32 = arith.constant 0 : i32
    %c0_i32_0 = arith.constant 0 : i32
    return %c0_i32, %arg1 : i32, i32
  }
  func.func @transform_8(%arg0: i32, %arg1: i32, %arg2: i32) -> (i32, i32) {
    %c0_i32 = arith.constant 0 : i32
    return %arg0, %arg1 : i32, i32
  }
  func.func @transform_9(%arg0: i32, %arg1: i32, %arg2: i32) -> (i32, i32) {
    %c0_i32 = arith.constant 0 : i32
    return %arg0, %arg1 : i32, i32
  }
}

</mosaic_0001>

<bundles_post_ra>
// kernel: resnet18_forward.1
= control target key start
LH: loop header
LB: loop body
LE: loop exit
PB: predicated region body
PF: predicated region fallthrough
CT: control target
= control target key end

     0   :  { %s2161_s30 = smov 0   ;;  %s2163_s10 = smov 0   ;;  %s2481_s0 = inlined_call_operand.vmem [shape: bf16[128,256], index: 0, kind: input, shape index: {}]   ;;  %s2482_s1 = inlined_call_operand.vmem [shape: bf16[128,256], index: 1, kind: input, shape index: {}]   ;;  %s2483_s2 = inlined_call_operand.vmem [shape: bf16[128,256], index: 2, kind: input, shape index: {}]   ;;  %s2484_s3 = inlined_call_operand.vmem [shape: bf16[256,128], index: 3, kind: input, shape index: {}]   ;;  %s2485_s4 = inlined_call_operand.vmem [shape: bf16[256,128], index: 4, kind: input, shape index: {}]   ;;  %s2486_s5 = inlined_call_operand.vmem [shape: bf16[256,128], index: 5, kind: input, shape index: {}]   ;;  %s2487_s6 = inlined_call_operand.vmem [shape: f32[1,128], index: 6, kind: input, shape index: {}]   ;;  %s2488_s7 = inlined_call_operand.vmem [shape: f32[1,128], index: 7, kind: input, shape index: {}]   ;;  %s2489_s8 = inlined_call_operand.vmem [shape: f32[128,128], index: 8, kind: output, shape index: {0}]   ;;  %s2490_s9 = inlined_call_operand.vmem [shape: f32[128,128], index: 9, kind: output, shape index: {1}]  }
   0x1   :  { %s2165_s11 = smov 0  }
   0x2 LB: > { %s39_s12 = sadd.s32 1, %s2105_s10  ;;  %p1666_p0 = scmp.ge.s32.totalorder %s2109_s11, 1  ;;  %s2109_s11 = sphi %s2165_s11, %s20_s11   ;;  %s2105_s10 = sphi %s2163_s10, %s2492_s10   ;;  %s2101_s30 = sphi %s2161_s30, %s2491_s30  }
   0x3   : > { %p41_p1 = scmp.ge.s32.totalorder %s39_s12, 2  ;;  %p424_p2 = scmp.lt.s32.totalorder %s2109_s11, 3 }
   0x5   : > { %s2494_s12 = smov (%p41_p1, %s39_s12), 0  ;;  %p425_p3 = pnand %p1666_p0, %p424_p2 }
   0x6   : > { %s1667_s25 = sshll.u32 (!%p425_p3), %s2101_s30, 3 }
   0x7   : > { %428 = sbr.rel (%p425_p3) target bundleno = 275 (0x113), region = 52  ;;  %p528_p4 = scmp.lt.s32.totalorder (!%p425_p3), %s1667_s25, 15 }
   0xc   : > { %v1988_v0 = vld [vmem:[%s2484_s3 + $0x38] sm:$0xff]  ;;  %v1987_v2 = vld [vmem:[%s2484_s3 + $0x30] sm:$0xff]  ;;  %v1986_v4 = vld [vmem:[%s2484_s3 + $0x28] sm:$0xff]  ;;  %s2496_s25 = smov (!%p528_p4, %s1667_s25), 15 }
   0xd   : > { %v1996_v1 = vld [vmem:[%s2484_s3 + $0x78] sm:$0xff]  ;;  %817 = vmatpush.bf16.msra.mxu0 %v1988_v0  ;;  %2045 = vmatpush.bf16.msra.mxu2 %v1988_v0  ;;  %v1995_v3 = vld [vmem:[%s2484_s3 + $0x70] sm:$0xff]  ;;  %v1994_v5 = vld [vmem:[%s2484_s3 + $0x68] sm:$0xff]  ;;  %s2218_s20 = sshll.u32 %s2496_s25, 3 }
   0xe   : > { %846 = vmatpush.bf16.msra.mxu1 %v1996_v1  ;;  %2053 = vmatpush.bf16.msra.mxu3 %v1996_v1  ;;  %v1985_v6 = vld [vmem:[%s2484_s3 + $0x20] sm:$0xff]  ;;  %v1984_v8 = vld [vmem:[%s2484_s3 + $0x18] sm:$0xff]  ;;  %v1983_v10 = vld [vmem:[%s2484_s3 + $0x10] sm:$0xff]  ;;  %s2227_s26 = scalar_lea.vmem %s2481_s0, %s2218_s20  ;;  %s2342_s23 = scalar_lea.vmem %s2482_s1, %s2218_s20 }
   0xf   : > { %v1993_v7 = vld [vmem:[%s2484_s3 + $0x60] sm:$0xff]  ;;  %v1992_v9 = vld [vmem:[%s2484_s3 + $0x58] sm:$0xff]  ;;  %v1991_v11 = vld [vmem:[%s2484_s3 + $0x50] sm:$0xff]  ;;  %s2354_s14 = scalar_lea.vmem %s2483_s2, %s2218_s20  ;;  %s2424_s24 = scalar_lea.vmem %s2489_s8, %s2218_s20 }
  0x10   : > { %v1982_v12 = vld [vmem:[%s2484_s3 + $0x8] sm:$0xff]  ;;  %v1981_v14 = vld [vmem:[%s2484_s3] sm:$0xff]  ;;  %v2012_v24 = vld [vmem:[%s2485_s4 + $0x38] sm:$0xff]  ;;  %s2430_s28 = scalar_lea.vmem %s2490_s9, %s2218_s20 }
  0x11   : > { %818 = vmatpush.bf16.msra.mxu0 %v1987_v2  ;;  %2046 = vmatpush.bf16.msra.mxu2 %v1987_v2  ;;  %v1990_v13 = vld [vmem:[%s2484_s3 + $0x48] sm:$0xff]  ;;  %v1989_v15 = vld [vmem:[%s2484_s3 + $0x40] sm:$0xff]  ;;  %v2020_v25 = vld [vmem:[%s2485_s4 + $0x78] sm:$0xff] }
  0x12   : > { %847 = vmatpush.bf16.msra.mxu1 %v1995_v3  ;;  %2054 = vmatpush.bf16.msra.mxu3 %v1995_v3  ;;  %v1682_v16 = vld [vmem:[%s2227_s26] sm:$0xf]  ;;  %v1974_v17 = vld [vmem:[%s2227_s26 + $0x4] sm:$0xf0]  ;;  %v1973_v20 = vld [vmem:[%s2227_s26 + $0x4] sm:$0xf] }
  0x13   : > { %v1698_v18 = vld [vmem:[%s2227_s26 + $0x20] sm:$0xf]  ;;  %v1978_v19 = vld [vmem:[%s2227_s26 + $0x24] sm:$0xf0]  ;;  %v1684_v21 = vld [vmem:[%s2227_s26 + $0x8] sm:$0xf0]  ;;  %v1683_v26 = vor.u32 %v1974_v17, %v1682_v16 }
  0x14   : > { %v1977_v22 = vld [vmem:[%s2227_s26 + $0x24] sm:$0xf]  ;;  %v1700_v23 = vld [vmem:[%s2227_s26 + $0x28] sm:$0xf0]  ;;  %v1699_v27 = vor.u32 %v1978_v19, %v1698_v18  ;;  %v1687_v28 = vor.u32 %v1973_v20, %v1684_v21  ;;  %v2036_v30 = vld [vmem:[%s2486_s5 + $0x38] sm:$0xff] }
  0x15   : > { %819 = vmatpush.bf16.msra.mxu0 %v1986_v4  ;;  %2047 = vmatpush.bf16.msra.mxu2 %v1986_v4  ;;  %v1703_v29 = vor.u32 %v1977_v22, %v1700_v23  ;;  %v2044_v31 = vld [vmem:[%s2486_s5 + $0x78] sm:$0xff]  ;;  %v2011_v32 = vld [vmem:[%s2485_s4 + $0x30] sm:$0xff]  ;;  %v2010_v36 = vld [vmem:[%s2485_s4 + $0x28] sm:$0xff] }
  0x16   : > { %848 = vmatpush.bf16.msra.mxu1 %v1994_v5  ;;  %2055 = vmatpush.bf16.msra.mxu3 %v1994_v5  ;;  %v2019_v33 = vld [vmem:[%s2485_s4 + $0x70] sm:$0xff]  ;;  %v2018_v37 = vld [vmem:[%s2485_s4 + $0x68] sm:$0xff]  ;;  %v2009_v40 = vld [vmem:[%s2485_s4 + $0x20] sm:$0xff] }
  0x17   : > { %v2035_v34 = vld [vmem:[%s2486_s5 + $0x30] sm:$0xff]  ;;  %v2034_v38 = vld [vmem:[%s2486_s5 + $0x28] sm:$0xff]  ;;  %v2017_v41 = vld [vmem:[%s2485_s4 + $0x60] sm:$0xff] }
  0x18   : > { %v2043_v35 = vld [vmem:[%s2486_s5 + $0x70] sm:$0xff]  ;;  %v2042_v39 = vld [vmem:[%s2486_s5 + $0x68] sm:$0xff]  ;;  %v2033_v42 = vld [vmem:[%s2486_s5 + $0x20] sm:$0xff] }
  0x19   : > { %820 = vmatpush.bf16.msra.mxu0 %v1985_v6  ;;  %2048 = vmatpush.bf16.msra.mxu2 %v1985_v6  ;;  %v2041_v43 = vld [vmem:[%s2486_s5 + $0x60] sm:$0xff]  ;;  %v1690_v44 = vld [vmem:[%s2227_s26 + $0x10] sm:$0xf]  ;;  %v1976_v45 = vld [vmem:[%s2227_s26 + $0x14] sm:$0xf0] }
  0x1a   : > { %849 = vmatpush.bf16.msra.mxu1 %v1993_v7  ;;  %2056 = vmatpush.bf16.msra.mxu3 %v1993_v7  ;;  %v1706_v46 = vld [vmem:[%s2227_s26 + $0x30] sm:$0xf]  ;;  %v1980_v47 = vld [vmem:[%s2227_s26 + $0x34] sm:$0xf0]  ;;  %v1975_v48 = vld [vmem:[%s2227_s26 + $0x14] sm:$0xf]  ;;  %v1691_v54 = vor.u32 %v1976_v45, %v1690_v44 }
  0x1b   : > { %v1692_v49 = vld [vmem:[%s2227_s26 + $0x18] sm:$0xf0]  ;;  %v1979_v50 = vld [vmem:[%s2227_s26 + $0x34] sm:$0xf]  ;;  %v1707_v55 = vor.u32 %v1980_v47, %v1706_v46  ;;  %v2006_v0 = vld [vmem:[%s2485_s4 + $0x8] sm:$0xff] }
  0x1c   : > { %v1708_v51 = vld [vmem:[%s2227_s26 + $0x38] sm:$0xf0]  ;;  %v1695_v56 = vor.u32 %v1975_v48, %v1692_v49  ;;  %v2007_v60 = vld [vmem:[%s2485_s4 + $0x10] sm:$0xff]  ;;  %v2014_v1 = vld [vmem:[%s2485_s4 + $0x48] sm:$0xff] }
  0x1d   : > { %821 = vmatpush.bf16.msra.mxu0 %v1984_v8  ;;  %2049 = vmatpush.bf16.msra.mxu2 %v1984_v8  ;;  %v2008_v52 = vld [vmem:[%s2485_s4 + $0x18] sm:$0xff]  ;;  %v1711_v57 = vor.u32 %v1979_v50, %v1708_v51  ;;  %v2015_v61 = vld [vmem:[%s2485_s4 + $0x50] sm:$0xff]  ;;  %v2030_v2 = vld [vmem:[%s2486_s5 + $0x8] sm:$0xff] }
  0x1e   : > { %850 = vmatpush.bf16.msra.mxu1 %v1992_v9  ;;  %2057 = vmatpush.bf16.msra.mxu3 %v1992_v9  ;;  %v2016_v53 = vld [vmem:[%s2485_s4 + $0x58] sm:$0xff]  ;;  %v2031_v62 = vld [vmem:[%s2486_s5 + $0x10] sm:$0xff]  ;;  %v2038_v3 = vld [vmem:[%s2486_s5 + $0x48] sm:$0xff] }
  0x1f   : > { %v2032_v58 = vld [vmem:[%s2486_s5 + $0x18] sm:$0xff]  ;;  %v2039_v63 = vld [vmem:[%s2486_s5 + $0x50] sm:$0xff]  ;;  %v2005_v4 = vld [vmem:[%s2485_s4] sm:$0xff] }
  0x20   : > { %v2040_v59 = vld [vmem:[%s2486_s5 + $0x58] sm:$0xff]  ;;  %v2013_v5 = vld [vmem:[%s2485_s4 + $0x40] sm:$0xff]  ;;  %v1998_v9 = vld [vmem:[%s2342_s23 + $0x4] sm:$0xf0] }
  0x21   : > { %822 = vmatpush.bf16.msra.mxu0 %v1983_v10  ;;  %2050 = vmatpush.bf16.msra.mxu2 %v1983_v10  ;;  %v2029_v6 = vld [vmem:[%s2486_s5] sm:$0xff]  ;;  %v1786_v20 = vld [vmem:[%s2342_s23 + $0x10] sm:$0xf]  ;;  %v2000_v21 = vld [vmem:[%s2342_s23 + $0x14] sm:$0xf0] }
  0x22   : > { %851 = vmatpush.bf16.msra.mxu1 %v1991_v11  ;;  %2058 = vmatpush.bf16.msra.mxu3 %v1991_v11  ;;  %v2037_v7 = vld [vmem:[%s2486_s5 + $0x40] sm:$0xff]  ;;  %v1780_v11 = vld [vmem:[%s2342_s23 + $0x8] sm:$0xf0]  ;;  %v1999_v22 = vld [vmem:[%s2342_s23 + $0x14] sm:$0xf] }
  0x23   : > { %v1778_v8 = vld [vmem:[%s2342_s23] sm:$0xf]  ;;  %v1997_v10 = vld [vmem:[%s2342_s23 + $0x4] sm:$0xf]  ;;  %v1788_v23 = vld [vmem:[%s2342_s23 + $0x18] sm:$0xf0] }
  0x24   : > { %v1779_v16 = vor.u32 %v1998_v9, %v1778_v8  ;;  %v1783_v17 = vor.u32 %v1997_v10, %v1780_v11  ;;  %v1802_v44 = vld [vmem:[%s2342_s23 + $0x30] sm:$0xf]  ;;  %v2004_v45 = vld [vmem:[%s2342_s23 + $0x34] sm:$0xf0]  ;;  %v2003_v46 = vld [vmem:[%s2342_s23 + $0x34] sm:$0xf] }
  0x25   : > { %823 = vmatpush.bf16.msra.mxu0 %v1982_v12  ;;  %2051 = vmatpush.bf16.msra.mxu2 %v1982_v12  ;;  %v1874_v12 = vld [vmem:[%s2354_s14] sm:$0xf]  ;;  %v1804_v47 = vld [vmem:[%s2342_s23 + $0x38] sm:$0xf0]  ;;  %v1898_v48 = vld [vmem:[%s2354_s14 + $0x30] sm:$0xf] }
  0x26   : > { %852 = vmatpush.bf16.msra.mxu1 %v1990_v13  ;;  %2059 = vmatpush.bf16.msra.mxu3 %v1990_v13  ;;  %v2022_v13 = vld [vmem:[%s2354_s14 + $0x4] sm:$0xf0]  ;;  %v2028_v49 = vld [vmem:[%s2354_s14 + $0x34] sm:$0xf0]  ;;  %v2027_v50 = vld [vmem:[%s2354_s14 + $0x34] sm:$0xf] }
  0x27   : > { %v1875_v18 = vor.u32 %v2022_v13, %v1874_v12  ;;  %v1900_v51 = vld [vmem:[%s2354_s14 + $0x38] sm:$0xf0] }
  0x29   : > { %824 = vmatpush.bf16.msra.mxu0 %v1981_v14  ;;  %2052 = vmatpush.bf16.msra.mxu2 %v1981_v14  ;;  %v2021_v14 = vld [vmem:[%s2354_s14 + $0x4] sm:$0xf] }
  0x2a   : > { %853 = vmatpush.bf16.msra.mxu1 %v1989_v15  ;;  %2060 = vmatpush.bf16.msra.mxu3 %v1989_v15  ;;  %v1876_v15 = vld [vmem:[%s2354_s14 + $0x8] sm:$0xf0] }
  0x2b   : > { %v1879_v19 = vor.u32 %v2021_v14, %v1876_v15  ;;  %v2413_v15 = vld [vmem:[%s2487_s6] ss:$0 sm:$0xff] }
  0x2c   : > { %825 = vmatmul.bf16.vlgmr.msra.gmra.mxu0 %v1683_v26  ;;  %835 = vmatmul.bf16.vlgmr.msra.gmra.mxu2 %v1699_v27  ;;  %v2023_v26 = vld [vmem:[%s2354_s14 + $0x14] sm:$0xf]  ;;  %v1884_v27 = vld [vmem:[%s2354_s14 + $0x18] sm:$0xf0] }
  0x2d   : > { %1051 = vmatpush.bf16.msrb.mxu2 %v2012_v24  ;;  %854 = vmatmul.bf16.vlgmr.msra.gmra.mxu1 %v1687_v28  ;;  %v1882_v24 = vld [vmem:[%s2354_s14 + $0x10] sm:$0xf]  ;;  %v1787_v28 = vor.u32 %v2000_v21, %v1786_v20 }
  0x2e   : > { %1080 = vmatpush.bf16.msrb.mxu3 %v2020_v25  ;;  %1285 = vmatpush.bf16.msrb.mxu0 %v2036_v30  ;;  %v2024_v25 = vld [vmem:[%s2354_s14 + $0x14] sm:$0xf0] }
  0x2f   : > { %864 = vmatmul.bf16.vlgmr.msra.gmra.mxu3 %v1703_v29  ;;  %1314 = vmatpush.bf16.msrb.mxu1 %v2044_v31  ;;  %v1791_v29 = vor.u32 %v1999_v22, %v1788_v23  ;;  %v1883_v30 = vor.u32 %v2024_v25, %v1882_v24  ;;  %v1887_v31 = vor.u32 %v2023_v26, %v1884_v27 }
  0x31   : > { %1052 = vmatpush.bf16.msrb.mxu2 %v2011_v32  ;;  %v1794_v32 = vld [vmem:[%s2342_s23 + $0x20] sm:$0xf] }
  0x32   : > { %1081 = vmatpush.bf16.msrb.mxu3 %v2019_v33  ;;  %1286 = vmatpush.bf16.msrb.mxu0 %v2035_v34  ;;  %v2002_v33 = vld [vmem:[%s2342_s23 + $0x24] sm:$0xf0]  ;;  %v2001_v34 = vld [vmem:[%s2342_s23 + $0x24] sm:$0xf] }
  0x33   : > { %1315 = vmatpush.bf16.msrb.mxu1 %v2043_v35  ;;  %v1796_v35 = vld [vmem:[%s2342_s23 + $0x28] sm:$0xf0] }
  0x35   : > { %1053 = vmatpush.bf16.msrb.mxu2 %v2010_v36  ;;  %v1890_v36 = vld [vmem:[%s2354_s14 + $0x20] sm:$0xf] }
  0x36   : > { %1082 = vmatpush.bf16.msrb.mxu3 %v2018_v37  ;;  %1287 = vmatpush.bf16.msrb.mxu0 %v2034_v38  ;;  %v2026_v37 = vld [vmem:[%s2354_s14 + $0x24] sm:$0xf0]  ;;  %v2025_v38 = vld [vmem:[%s2354_s14 + $0x24] sm:$0xf] }
  0x37   : > { %1316 = vmatpush.bf16.msrb.mxu1 %v2042_v39  ;;  %v1892_v39 = vld [vmem:[%s2354_s14 + $0x28] sm:$0xf0] }
  0x39   : > { %1054 = vmatpush.bf16.msrb.mxu2 %v2009_v40  ;;  %v1795_v40 = vor.u32 %v2002_v33, %v1794_v32 }
  0x3a   : > { %1083 = vmatpush.bf16.msrb.mxu3 %v2017_v41  ;;  %1288 = vmatpush.bf16.msrb.mxu0 %v2033_v42  ;;  %v1799_v41 = vor.u32 %v2001_v34, %v1796_v35  ;;  %v1891_v42 = vor.u32 %v2026_v37, %v1890_v36 }
  0x3b   : > { %1317 = vmatpush.bf16.msrb.mxu1 %v2041_v43  ;;  %v1895_v43 = vor.u32 %v2025_v38, %v1892_v39 }
  0x3c   : > { %830 = vmatmul.bf16.gmra.mxu0 %v1691_v54  ;;  %840 = vmatmul.bf16.gmra.mxu2 %v1707_v55  ;;  %v1899_v54 = vor.u32 %v2028_v49, %v1898_v48  ;;  %v1903_v55 = vor.u32 %v2027_v50, %v1900_v51 }
  0x3d   : > { %1055 = vmatpush.bf16.msrb.mxu2 %v2008_v52  ;;  %859 = vmatmul.bf16.gmra.mxu1 %v1695_v56  ;;  %v1803_v52 = vor.u32 %v2004_v45, %v1802_v44 }
  0x3e   : > { %1084 = vmatpush.bf16.msrb.mxu3 %v2016_v53  ;;  %1289 = vmatpush.bf16.msrb.mxu0 %v2032_v58  ;;  %v1807_v53 = vor.u32 %v2003_v46, %v1804_v47 }
  0x3f   : > { %869 = vmatmul.bf16.gmra.mxu3 %v1711_v57  ;;  %1318 = vmatpush.bf16.msrb.mxu1 %v2040_v59 }
  0x41   : > { %1056 = vmatpush.bf16.msrb.mxu2 %v2007_v60 }
  0x42   : > { %1085 = vmatpush.bf16.msrb.mxu3 %v2015_v61  ;;  %1290 = vmatpush.bf16.msrb.mxu0 %v2031_v62 }
  0x43   : > { %1319 = vmatpush.bf16.msrb.mxu1 %v2039_v63 }
  0x45   : > { %1057 = vmatpush.bf16.msrb.mxu2 %v2006_v0 }
  0x46   : > { %1086 = vmatpush.bf16.msrb.mxu3 %v2014_v1  ;;  %1291 = vmatpush.bf16.msrb.mxu0 %v2030_v2 }
  0x47   : > { %1320 = vmatpush.bf16.msrb.mxu1 %v2038_v3 }
  0x49   : > { %1058 = vmatpush.bf16.msrb.mxu2 %v2005_v4 }
  0x4a   : > { %1087 = vmatpush.bf16.msrb.mxu3 %v2013_v5  ;;  %1292 = vmatpush.bf16.msrb.mxu0 %v2029_v6 }
  0x4b   : > { %1321 = vmatpush.bf16.msrb.mxu1 %v2037_v7 }
  0x4c   : > { %1059 = vmatmul.bf16.vlgmr.msrb.gmra.mxu2 %v1779_v16  ;;  %v2418_v16 = vld [vmem:[%s2488_s7] ss:$0 sm:$0xff] }
  0x4d   : > { %1293 = vmatmul.bf16.vlgmr.msrb.gmra.mxu0 %v1875_v18 }
  0x4e   : > { %1322 = vmatmul.bf16.vlgmr.msrb.gmra.mxu1 %v1879_v19 }
  0x4f   : > { %1088 = vmatmul.bf16.vlgmr.msrb.gmra.mxu3 %v1783_v17 }
  0x5c   : > { %1064 = vmatmul.bf16.gmra.mxu2 %v1787_v28 }
  0x5d   : > { %1298 = vmatmul.bf16.gmra.mxu0 %v1883_v30 }
  0x5e   : > { %1327 = vmatmul.bf16.gmra.mxu1 %v1887_v31 }
  0x5f   : > { %1093 = vmatmul.bf16.gmra.mxu3 %v1791_v29 }
  0x6c   : > { %1069 = vmatmul.bf16.gmra.mxu2 %v1795_v40 }
  0x6d   : > { %1303 = vmatmul.bf16.gmra.mxu0 %v1891_v42 }
  0x6e   : > { %1332 = vmatmul.bf16.gmra.mxu1 %v1895_v43 }
  0x6f   : > { %1098 = vmatmul.bf16.gmra.mxu3 %v1799_v41 }
  0x7c   : > { %1074 = vmatmul.bf16.gmra.mxu2 %v1803_v52 }
  0x7d   : > { %1308 = vmatmul.bf16.gmra.mxu0 %v1899_v54 }
  0x7e   : > { %1337 = vmatmul.bf16.gmra.mxu1 %v1903_v55 }
  0x7f   : > { %1103 = vmatmul.bf16.gmra.mxu3 %v1807_v53 }
  0xa9   : > { %v826_v56 = vpop.f32.mrf.mxu0 }
  0xaa   : > { %v855_v57 = vpop.f32.mrf.mxu1 }
  0xab   : > { %v856_v11 = vadd.f32 %v855_v57, %v826_v56 }
  0xaf   : > { %v2394_v58 = vpop.f32.mrf.mxu2 }
  0xb1   : > { %v828_v60 = vpop.f32.mrf.mxu0 }
  0xb2   : > { %v2396_v59 = vpop.f32.mrf.mxu3  ;;  %v857_v61 = vpop.f32.mrf.mxu1 }
  0xb3   : > { %v858_v25 = vadd.f32 %v857_v61, %v828_v60 }
  0xb7   : > { %v2398_v62 = vpop.f32.mrf.mxu2 }
  0xb9   : > { %v831_v0 = vpop.f32.mrf.mxu0 }
  0xba   : > { %v2400_v63 = vpop.f32.mrf.mxu3  ;;  %v860_v1 = vpop.f32.mrf.mxu1 }
  0xbb   : > { %v861_v37 = vadd.f32 %v860_v1, %v831_v0  ;;  %v866_v1 = vadd.f32 %v2396_v59, %v2394_v58  ;;  %v868_v58 = vadd.f32 %v2400_v63, %v2398_v62 }
  0xbf   : > { %v2402_v2 = vpop.f32.mrf.mxu2 }
  0xc1   : > { %v833_v4 = vpop.f32.mrf.mxu0 }
  0xc2   : > { %v2404_v3 = vpop.f32.mrf.mxu3  ;;  %v862_v5 = vpop.f32.mrf.mxu1 }
  0xc3   : > { %v863_v49 = vadd.f32 %v862_v5, %v833_v4  ;;  %v871_v62 = vadd.f32 %v2404_v3, %v2402_v2 }
  0xc7   : > { %v2406_v6 = vpop.f32.mrf.mxu2 }
  0xca   : > { %v2408_v7 = vpop.f32.mrf.mxu3  ;;  %v1294_v8 = vpop.f32.mrf.mxu0 }
  0xcb   : > { %v1323_v9 = vpop.f32.mrf.mxu1  ;;  %v873_v2 = vadd.f32 %v2408_v7, %v2406_v6 }
  0xcc   : > { %v1324_v10 = vadd.f32 %v1323_v9, %v1294_v8 }
  0xce   : > { %v1383_v14 = vsub.f32 %v1324_v10, %v856_v11 }
  0xcf   : > { %v1060_v12 = vpop.f32.mrf.mxu2 }
  0xd2   : > { %v1089_v13 = vpop.f32.mrf.mxu3  ;;  %v1296_v18 = vpop.f32.mrf.mxu0 }
  0xd3   : > { %v1090_v17 = vadd.f32 %v1089_v13, %v1060_v12  ;;  %v1325_v21 = vpop.f32.mrf.mxu1 }
  0xd4   : > { %v1326_v24 = vadd.f32 %v1325_v21, %v1296_v18 }
  0xd5   : > { %v1351_v19 = vsub.f32 %v856_v11, %v1090_v17  ;;  %v1391_v20 = vsub.f32 %v1383_v14, %v1090_v17 }
  0xd6   : > { %v1384_v28 = vsub.f32 %v1326_v24, %v858_v25 }
  0xd7   : > { %v1359_v22 = vadd.f32 %v2413_v15, %v1351_v19  ;;  %v1399_v23 = vadd.f32 %v2418_v16, %v1391_v20  ;;  %v1062_v26 = vpop.f32.mrf.mxu2 }
  0xd9   : > { %1367 = vst [vmem:[%s2424_s24] sm:$0xff] %v1359_v22 }
  0xda   : > { %1407 = vst [vmem:[%s2430_s28] sm:$0xff] %v1399_v23  ;;  %v1091_v27 = vpop.f32.mrf.mxu3  ;;  %v1299_v30 = vpop.f32.mrf.mxu0 }
  0xdb   : > { %v1092_v29 = vadd.f32 %v1091_v27, %v1062_v26  ;;  %v1328_v33 = vpop.f32.mrf.mxu1 }
  0xdc   : > { %v1329_v36 = vadd.f32 %v1328_v33, %v1299_v30 }
  0xdd   : > { %v1352_v31 = vsub.f32 %v858_v25, %v1092_v29  ;;  %v1392_v32 = vsub.f32 %v1384_v28, %v1092_v29 }
  0xde   : > { %v1385_v40 = vsub.f32 %v1329_v36, %v861_v37 }
  0xdf   : > { %v1360_v34 = vadd.f32 %v2413_v15, %v1352_v31  ;;  %v1400_v35 = vadd.f32 %v2418_v16, %v1392_v32  ;;  %v1065_v38 = vpop.f32.mrf.mxu2 }
  0xe1   : > { %1368 = vst [vmem:[%s2424_s24 + $0x8] sm:$0xff] %v1360_v34 }
  0xe2   : > { %1408 = vst [vmem:[%s2430_s28 + $0x8] sm:$0xff] %v1400_v35  ;;  %v1094_v39 = vpop.f32.mrf.mxu3  ;;  %v1301_v42 = vpop.f32.mrf.mxu0 }
  0xe3   : > { %v1095_v41 = vadd.f32 %v1094_v39, %v1065_v38  ;;  %v1330_v45 = vpop.f32.mrf.mxu1 }
  0xe4   : > { %v1331_v48 = vadd.f32 %v1330_v45, %v1301_v42 }
  0xe5   : > { %v1353_v43 = vsub.f32 %v861_v37, %v1095_v41  ;;  %v1393_v44 = vsub.f32 %v1385_v40, %v1095_v41 }
  0xe6   : > { %v1386_v52 = vsub.f32 %v1331_v48, %v863_v49 }
  0xe7   : > { %v1361_v46 = vadd.f32 %v2413_v15, %v1353_v43  ;;  %v1401_v47 = vadd.f32 %v2418_v16, %v1393_v44  ;;  %v1067_v50 = vpop.f32.mrf.mxu2 }
  0xe9   : > { %1369 = vst [vmem:[%s2424_s24 + $0x10] sm:$0xff] %v1361_v46 }
  0xea   : > { %1409 = vst [vmem:[%s2430_s28 + $0x10] sm:$0xff] %v1401_v47  ;;  %v1096_v51 = vpop.f32.mrf.mxu3  ;;  %v1304_v54 = vpop.f32.mrf.mxu0 }
  0xeb   : > { %v1097_v53 = vadd.f32 %v1096_v51, %v1067_v50  ;;  %v1333_v57 = vpop.f32.mrf.mxu1 }
  0xec   : > { %v1334_v0 = vadd.f32 %v1333_v57, %v1304_v54 }
  0xed   : > { %v1354_v55 = vsub.f32 %v863_v49, %v1097_v53  ;;  %v1394_v56 = vsub.f32 %v1386_v52, %v1097_v53 }
  0xee   : > { %v1387_v8 = vsub.f32 %v1334_v0, %v866_v1 }
  0xef   : > { %v1362_v60 = vadd.f32 %v2413_v15, %v1354_v55  ;;  %v1402_v61 = vadd.f32 %v2418_v16, %v1394_v56  ;;  %v1070_v4 = vpop.f32.mrf.mxu2 }
  0xf1   : > { %1370 = vst [vmem:[%s2424_s24 + $0x18] sm:$0xff] %v1362_v60 }
  0xf2   : > { %1410 = vst [vmem:[%s2430_s28 + $0x18] sm:$0xff] %v1402_v61  ;;  %v1099_v5 = vpop.f32.mrf.mxu3  ;;  %v1306_v10 = vpop.f32.mrf.mxu0 }
  0xf3   : > { %v1100_v9 = vadd.f32 %v1099_v5, %v1070_v4  ;;  %v1335_v13 = vpop.f32.mrf.mxu1 }
  0xf4   : > { %v1336_v18 = vadd.f32 %v1335_v13, %v1306_v10 }
  0xf5   : > { %v1355_v11 = vsub.f32 %v866_v1, %v1100_v9  ;;  %v1395_v12 = vsub.f32 %v1387_v8, %v1100_v9 }
  0xf6   : > { %v1388_v20 = vsub.f32 %v1336_v18, %v868_v58 }
  0xf7   : > { %v1363_v14 = vadd.f32 %v2413_v15, %v1355_v11  ;;  %v1403_v17 = vadd.f32 %v2418_v16, %v1395_v12  ;;  %v1072_v59 = vpop.f32.mrf.mxu2 }
  0xf9   : > { %1371 = vst [vmem:[%s2424_s24 + $0x20] sm:$0xff] %v1363_v14 }
  0xfa   : > { %1411 = vst [vmem:[%s2430_s28 + $0x20] sm:$0xff] %v1403_v17  ;;  %v1101_v19 = vpop.f32.mrf.mxu3  ;;  %v1309_v22 = vpop.f32.mrf.mxu0 }
  0xfb   : > { %v1102_v21 = vadd.f32 %v1101_v19, %v1072_v59  ;;  %v1338_v25 = vpop.f32.mrf.mxu1 }
  0xfc   : > { %v1339_v28 = vadd.f32 %v1338_v25, %v1309_v22 }
  0xfd   : > { %v1356_v23 = vsub.f32 %v868_v58, %v1102_v21  ;;  %v1396_v24 = vsub.f32 %v1388_v20, %v1102_v21 }
  0xfe   : > { %v1389_v30 = vsub.f32 %v1339_v28, %v871_v62 }
  0xff   : > { %v1364_v26 = vadd.f32 %v2413_v15, %v1356_v23  ;;  %v1404_v27 = vadd.f32 %v2418_v16, %v1396_v24  ;;  %v1075_v63 = vpop.f32.mrf.mxu2 }
 0x101   : > { %1372 = vst [vmem:[%s2424_s24 + $0x28] sm:$0xff] %v1364_v26 }
 0x102   : > { %1412 = vst [vmem:[%s2430_s28 + $0x28] sm:$0xff] %v1404_v27  ;;  %v1104_v29 = vpop.f32.mrf.mxu3  ;;  %v1311_v32 = vpop.f32.mrf.mxu0 }
 0x103   : > { %v1105_v31 = vadd.f32 %v1104_v29, %v1075_v63  ;;  %v1340_v35 = vpop.f32.mrf.mxu1 }
 0x104   : > { %v1341_v38 = vadd.f32 %v1340_v35, %v1311_v32 }
 0x105   : > { %v1357_v33 = vsub.f32 %v871_v62, %v1105_v31  ;;  %v1397_v34 = vsub.f32 %v1389_v30, %v1105_v31 }
 0x106   : > { %v1390_v40 = vsub.f32 %v1341_v38, %v873_v2 }
 0x107   : > { %v1365_v36 = vadd.f32 %v2413_v15, %v1357_v33  ;;  %v1405_v37 = vadd.f32 %v2418_v16, %v1397_v34  ;;  %v1077_v3 = vpop.f32.mrf.mxu2 }
 0x109   : > { %1373 = vst [vmem:[%s2424_s24 + $0x30] sm:$0xff] %v1365_v36 }
 0x10a   : > { %1413 = vst [vmem:[%s2430_s28 + $0x30] sm:$0xff] %v1405_v37  ;;  %v1106_v39 = vpop.f32.mrf.mxu3 }
 0x10b   : > { %v1107_v41 = vadd.f32 %v1106_v39, %v1077_v3 }
 0x10d   : > { %v1358_v42 = vsub.f32 %v873_v2, %v1107_v41  ;;  %v1398_v43 = vsub.f32 %v1390_v40, %v1107_v41 }
 0x10f   : > { %v1366_v44 = vadd.f32 %v2413_v15, %v1358_v42  ;;  %v1406_v45 = vadd.f32 %v2418_v16, %v1398_v43 }
 0x111   : > { %1374 = vst [vmem:[%s2424_s24 + $0x38] sm:$0xff] %v1366_v44 }
 0x112   : > { %1414 = vst [vmem:[%s2430_s28 + $0x38] sm:$0xff] %v1406_v45 }
 0x113 PF: > { %s20_s11 = sadd.s32 1, %s2109_s11   ;;  %s2491_s30 = smov %s2105_s10 }
 0x114   : > { %p17_p5 = scmp.ge.s32.totalorder %s20_s11, 4   ;;  %s2492_s10 = smov %s2494_s12 }
 0x116   :  { %19 = sbr.rel (!%p17_p5) target bundleno = 2 (0x2), region = 119 }

</bundles_post_ra>
